<compile_context>
chip_gen: v5e
topology: v5e:2x2
jax: 0.10.0
libtpu: 0.0.40
codegen_flags: <defaults>
</compile_context>

<pallas_src>
import functools

import jax
import jax.numpy as jnp
from jax.experimental import pallas as pl
from jax.experimental.pallas import tpu as pltpu


def _round_up(a, b):
    return (a + b - 1) // b * b


def _lora_qkv_kernel(x_ref, w_ref, bias_ref, a_ref, b_ref, out_ref):
    """qkv = x @ W + bias + (x @ A_cat) @ B_cat   (f32 accumulation)."""
    x = x_ref[...]                                             # (tm, dim) bf16

    # Base projection on the MXU, f32 accumulator.
    acc = jnp.dot(x, w_ref[...], preferred_element_type=jnp.float32)

    # Fused LoRA: one narrow A matmul, one block-diagonal B matmul that
    # lands the q/k/v deltas directly in their output column slices.
    low = jnp.dot(x, a_ref[...], preferred_element_type=jnp.float32)  # (tm, R)
    acc = acc + jnp.dot(low.astype(b_ref.dtype), b_ref[...],
                        preferred_element_type=jnp.float32)           # (tm, 3*dim)

    acc = acc + bias_ref[...]                                  # bias is (1, 3*dim) f32

    # Single unmasked full-width, lane-dense store.
    out_ref[...] = acc.astype(out_ref.dtype)


def lora_qkv(x, w_qkv, b_qkv, a_q, b_q,
             a_v=None, b_v=None, a_k=None, b_k=None,
             *, tm=256, compute_dtype=jnp.bfloat16):
    """x: (B, N, C).  Weights are (in, out) layouts.  Returns (B, N, 3*C)."""
    B, N, C = x.shape
    dim = C
    T = B * N
    out_dtype = x.dtype

    # ---- pack the LoRA pairs into A_cat (dim, R) and block-diag B_cat ----
    a_parts, b_parts, col_off = [a_q], [b_q], [0]
    if a_k is not None and b_k is not None:
        a_parts.append(a_k); b_parts.append(b_k); col_off.append(dim)
    if a_v is not None and b_v is not None:
        a_parts.append(a_v); b_parts.append(b_v); col_off.append(2 * dim)

    R = sum(a.shape[1] for a in a_parts)
    R_pad = _round_up(max(R, 8), 8)                 # keep sublane-friendly

    a_cat = jnp.zeros((dim, R_pad), dtype=jnp.float32)
    b_cat = jnp.zeros((R_pad, 3 * dim), dtype=jnp.float32)
    off = 0
    for a_m, b_m, c0 in zip(a_parts, b_parts, col_off):
        r = a_m.shape[1]
        a_cat = a_cat.at[:, off:off + r].set(a_m.astype(jnp.float32))
        b_cat = b_cat.at[off:off + r, c0:c0 + dim].set(b_m.astype(jnp.float32))
        off += r

    # ---- cast matmul operands to bf16; bias stays f32 --------------------
    x2 = x.reshape(T, dim).astype(compute_dtype)
    w = w_qkv.astype(compute_dtype)
    a_cat = a_cat.astype(compute_dtype)
    b_cat = b_cat.astype(compute_dtype)
    if b_qkv is None:
        b_qkv = jnp.zeros((3 * dim,), dtype=jnp.float32)
    bias = b_qkv.astype(jnp.float32).reshape(1, 3 * dim)

    # ---- token tiling: big tiles, padded T, multiple-of-16 tm ------------
    tm_eff = max(16, min(tm, _round_up(T, 16)))
    tm_eff = _round_up(tm_eff, 16)
    T_pad = _round_up(T, tm_eff)
    if T_pad != T:
        x2 = jnp.pad(x2, ((0, T_pad - T), (0, 0)))
    grid = (T_pad // tm_eff,)

    # ---- VMEM budget: resident single-buffered weights + 2x tiles --------
    c_sz = jnp.dtype(compute_dtype).itemsize
    o_sz = jnp.dtype(out_dtype).itemsize
    resident_bytes = (dim * 3 * dim * c_sz            # W
                      + 3 * dim * 4                   # bias (f32)
                      + dim * R_pad * c_sz            # A_cat
                      + R_pad * 3 * dim * c_sz)       # B_cat
    tile_bytes = 2 * tm_eff * dim * c_sz + 2 * tm_eff * 3 * dim * o_sz
    vmem_limit = int(min(64 << 20,
                         max(32 << 20,
                             (resident_bytes + tile_bytes) * 3 // 2 + (4 << 20))))

    resident = functools.partial(pl.BlockSpec,
                                 index_map=lambda i: (0, 0),
                                 pipeline_mode=pl.Buffered(1))

    out = pl.pallas_call(
        _lora_qkv_kernel,
        out_shape=jax.ShapeDtypeStruct((T_pad, 3 * dim), out_dtype),
        grid_spec=pltpu.PrefetchScalarGridSpec(
            num_scalar_prefetch=0,
            grid=grid,
            in_specs=[
                pl.BlockSpec((tm_eff, dim), lambda i: (i, 0)),   # x tile (pipelined)
                resident((dim, 3 * dim)),                        # W   (resident)
                resident((1, 3 * dim)),                          # bias(resident)
                resident((dim, R_pad)),                          # A_cat
                resident((R_pad, 3 * dim)),                      # B_cat
            ],
            out_specs=pl.BlockSpec((tm_eff, 3 * dim), lambda i: (i, 0)),
        ),
        compiler_params=pltpu.CompilerParams(
            dimension_semantics=("parallel",),
            vmem_limit_bytes=vmem_limit),
    )(x2, w, bias, a_cat, b_cat)

    return out[:T].reshape(B, N, 3 * dim)


def _reference(x, w_qkv, b_qkv, a_q, b_q, a_v, b_v, a_k, b_k):
    """Pure-JAX f32 replica of the PyTorch forward (same (in,out) layout)."""
    dim = x.shape[-1]
    qkv = jnp.einsum("bnc,co->bno", x, w_qkv) + b_qkv
    new_q = jnp.einsum("bnr,rd->bnd", jnp.einsum("bnc,cr->bnr", x, a_q), b_q)
    qkv = qkv.at[:, :, :dim].add(new_q)
    if a_v is not None:
        new_v = jnp.einsum("bnr,rd->bnd", jnp.einsum("bnc,cr->bnr", x, a_v), b_v)
        qkv = qkv.at[:, :, -dim:].add(new_v)
    if a_k is not None:
        new_k = jnp.einsum("bnr,rd->bnd", jnp.einsum("bnc,cr->bnr", x, a_k), b_k)
        qkv = qkv.at[:, :, dim:2 * dim].add(new_k)
    return qkv


if __name__ == "__main__":
    # Small, module-consistent shapes: x is a (B, N, C) token sequence.
    B, N, dim, rank = 2, 8, 128, 8

    key = jax.random.PRNGKey(0)
    keys = jax.random.split(key, 9)
    scale = 0.02

    x = jax.random.normal(keys[0], (B, N, dim), dtype=jnp.float32)

    # qkv = nn.Linear(dim, 3*dim, bias=True); weights stored as (in, out).
    w_qkv = jax.random.normal(keys[1], (dim, 3 * dim), dtype=jnp.float32) * scale
    b_qkv = jax.random.normal(keys[2], (3 * dim,), dtype=jnp.float32) * scale

    # LoRA pairs: A: dim -> rank, B: rank -> dim (no bias), for q, v, k.
    a_q = jax.random.normal(keys[3], (dim, rank), dtype=jnp.float32) * scale
    b_q = jax.random.normal(keys[4], (rank, dim), dtype=jnp.float32) * scale
    a_v = jax.random.normal(keys[5], (dim, rank), dtype=jnp.float32) * scale
    b_v = jax.random.normal(keys[6], (rank, dim), dtype=jnp.float32) * scale
    a_k = jax.random.normal(keys[7], (dim, rank), dtype=jnp.float32) * scale
    b_k = jax.random.normal(keys[8], (rank, dim), dtype=jnp.float32) * scale

    out = lora_qkv(x, w_qkv, b_qkv, a_q, b_q, a_v, b_v, a_k, b_k)
    out = jax.block_until_ready(out)

    ref = _reference(x, w_qkv, b_qkv, a_q, b_q, a_v, b_v, a_k, b_k)
    assert out.shape == (B, N, 3 * dim)
    # bf16 matmul operands with f32 accumulation -> loosened tolerance.
    assert jnp.allclose(out, ref, atol=1e-2, rtol=1e-2), (
        float(jnp.max(jnp.abs(out - ref))))

    print("KERNEL_OK")
</pallas_src>

<mosaic_0001>
module attributes {stable_mosaic.version = 11 : i64} {
  func.func @_lora_qkv_kernel(%arg0: i32, %arg1: memref<16x128xbf16, #tpu.memory_space<vmem>>, %arg2: memref<128x384xbf16, #tpu.memory_space<vmem>>, %arg3: memref<1x384xf32, #tpu.memory_space<vmem>>, %arg4: memref<128x24xbf16, #tpu.memory_space<vmem>>, %arg5: memref<24x384xbf16, #tpu.memory_space<vmem>>, %arg6: memref<16x384xf32, #tpu.memory_space<vmem>>) attributes {dimension_semantics = [#tpu.dimension_semantics<parallel>], iteration_bounds = array<i64: 1>, scalar_prefetch = 0 : i64, scratch_operands = 0 : i64, tpu.core_type = #tpu.core_type<tc>, window_params = [{transform_indices = @transform_0, window_bounds = array<i64: 16, 128>}, {pipeline_mode = #tpu.pipeline_mode<synchronous>, transform_indices = @transform_1, window_bounds = array<i64: 128, 384>}, {pipeline_mode = #tpu.pipeline_mode<synchronous>, transform_indices = @transform_2, window_bounds = array<i64: 1, 384>}, {pipeline_mode = #tpu.pipeline_mode<synchronous>, transform_indices = @transform_3, window_bounds = array<i64: 128, 24>}, {pipeline_mode = #tpu.pipeline_mode<synchronous>, transform_indices = @transform_4, window_bounds = array<i64: 24, 384>}, {transform_indices = @transform_5, window_bounds = array<i64: 16, 384>}]} {
    %c0 = arith.constant 0 : index
    %c0_0 = arith.constant 0 : index
    %0 = vector.load %arg1[%c0, %c0_0] : memref<16x128xbf16, #tpu.memory_space<vmem>>, vector<16x128xbf16>
    %c0_1 = arith.constant 0 : index
    %c0_2 = arith.constant 0 : index
    %1 = vector.load %arg2[%c0_1, %c0_2] : memref<128x384xbf16, #tpu.memory_space<vmem>>, vector<128x384xbf16>
    %cst = arith.constant dense<0.000000e+00> : vector<16x384xf32>
    %2 = tpu.matmul %0, %1, %cst {dimension_numbers = #tpu.dot_dimension_numbers<[1], [0], [0], [1], [0, 0, 1, 1], [], []>} : vector<16x128xbf16>, vector<128x384xbf16>, vector<16x384xf32> -> vector<16x384xf32>
    %c0_3 = arith.constant 0 : index
    %c0_4 = arith.constant 0 : index
    %3 = vector.load %arg4[%c0_3, %c0_4] : memref<128x24xbf16, #tpu.memory_space<vmem>>, vector<128x24xbf16>
    %cst_5 = arith.constant dense<0.000000e+00> : vector<16x24xf32>
    %4 = tpu.matmul %0, %3, %cst_5 {dimension_numbers = #tpu.dot_dimension_numbers<[1], [0], [0], [1], [0, 0, 1, 1], [], []>} : vector<16x128xbf16>, vector<128x24xbf16>, vector<16x24xf32> -> vector<16x24xf32>
    %5 = arith.truncf %4 : vector<16x24xf32> to vector<16x24xbf16>
    %c0_6 = arith.constant 0 : index
    %c0_7 = arith.constant 0 : index
    %6 = vector.load %arg5[%c0_6, %c0_7] : memref<24x384xbf16, #tpu.memory_space<vmem>>, vector<24x384xbf16>
    %cst_8 = arith.constant dense<0.000000e+00> : vector<16x384xf32>
    %7 = tpu.matmul %5, %6, %cst_8 {dimension_numbers = #tpu.dot_dimension_numbers<[1], [0], [0], [1], [0, 0, 1, 1], [], []>} : vector<16x24xbf16>, vector<24x384xbf16>, vector<16x384xf32> -> vector<16x384xf32>
    %8 = arith.addf %2, %7 : vector<16x384xf32>
    %c0_9 = arith.constant 0 : index
    %c0_10 = arith.constant 0 : index
    %9 = vector.load %arg3[%c0_9, %c0_10] : memref<1x384xf32, #tpu.memory_space<vmem>>, vector<1x384xf32>
    %10 = vector.broadcast %9 : vector<1x384xf32> to vector<16x384xf32>
    %11 = arith.addf %8, %10 : vector<16x384xf32>
    %c0_11 = arith.constant 0 : index
    %c0_12 = arith.constant 0 : index
    %12 = vector.load %arg6[%c0_11, %c0_12] : memref<16x384xf32, #tpu.memory_space<vmem>>, vector<16x384xf32>
    tpu.vector_store %arg6[%c0_11, %c0_12], %11 {strides = array<i32>} : memref<16x384xf32, #tpu.memory_space<vmem>>, vector<16x384xf32>,
    return
  }
  func.func @transform_0(%arg0: i32) -> (i32, i32) {
    %c0_i32 = arith.constant 0 : i32
    %c0_i32_0 = arith.constant 0 : i32
    return %arg0, %c0_i32 : i32, i32
  }
  func.func @transform_1(%arg0: i32) -> (i32, i32) {
    %c0_i32 = arith.constant 0 : i32
    %c0_i32_0 = arith.constant 0 : i32
    %c0_i32_1 = arith.constant 0 : i32
    return %c0_i32, %c0_i32_0 : i32, i32
  }
  func.func @transform_2(%arg0: i32) -> (i32, i32) {
    %c0_i32 = arith.constant 0 : i32
    %c0_i32_0 = arith.constant 0 : i32
    %c0_i32_1 = arith.constant 0 : i32
    return %c0_i32, %c0_i32_0 : i32, i32
  }
  func.func @transform_3(%arg0: i32) -> (i32, i32) {
    %c0_i32 = arith.constant 0 : i32
    %c0_i32_0 = arith.constant 0 : i32
    %c0_i32_1 = arith.constant 0 : i32
    return %c0_i32, %c0_i32_0 : i32, i32
  }
  func.func @transform_4(%arg0: i32) -> (i32, i32) {
    %c0_i32 = arith.constant 0 : i32
    %c0_i32_0 = arith.constant 0 : i32
    %c0_i32_1 = arith.constant 0 : i32
    return %c0_i32, %c0_i32_0 : i32, i32
  }
  func.func @transform_5(%arg0: i32) -> (i32, i32) {
    %c0_i32 = arith.constant 0 : i32
    %c0_i32_0 = arith.constant 0 : i32
    return %arg0, %c0_i32 : i32, i32
  }
}

</mosaic_0001>

<bundles_post_ra>
// kernel: tpu_custom_call.1
= control target key start
LH: loop header
LB: loop body
LE: loop exit
PB: predicated region body
PF: predicated region fallthrough
CT: control target
= control target key end

     0   :  { %10 = vsyncpa [#allocation3], 0  ;;  %s798_s0 = inlined_call_operand.vmem [shape: bf16[16,128], index: 0, kind: input, shape index: {}]   ;;  %s799_s1 = inlined_call_operand.hbm [shape: bf16[128,384], index: 1, kind: input, shape index: {}]   ;;  %s800_s2 = inlined_call_operand.vmem [shape: f32[1,384], index: 2, kind: input, shape index: {}]   ;;  %s801_s3 = inlined_call_operand.vmem [shape: bf16[128,24], index: 3, kind: input, shape index: {}]   ;;  %s802_s4 = inlined_call_operand.vmem [shape: bf16[24,384], index: 4, kind: input, shape index: {}]   ;;  %s803_s5 = inlined_call_operand.hbm [shape: f32[16,384], index: 5, kind: output, shape index: {}]  }
   0x1   :  { %11 = vsyncpa [#allocation4], 0  ;;  %s18_s20 = sshll.u32 %s799_s1, 4  ;;  %s693_s21 = smov [#allocation2]   ;;  %s19_s20 = int_to_ptr.hbm [resolvable:$true] %s18_s20 }
   0x2   :  { %s20_s22 = sshll.u32 %s693_s21, 4  ;;  %s694_s23 = smov 192   ;;  %s21_s22 = int_to_ptr.vmem [resolvable:$true] %s20_s22 }
   0x3   :  { %s695_s24 = smov 12  }
   0x4   :  { %26 = dma.hbm_to_vmem [thread:$0]  %s19_s20, 3072, %s21_s22, [#allocation3], %s694_s23, %s694_s23, %s695_s24  }
   0x5   :  { %689 = dma.done.wait [#allocation3], 3072  }
   0x6   :  { %690 = vsyncadd [#allocation3], 4294964224  ;;  %v631_v0 = vld [vmem:[%s801_s3 + $0x38] sm:$0xff]  ;;  %v630_v1 = vld [vmem:[%s801_s3 + $0x30] sm:$0xff]  ;;  %vm191_vm0 = vcmask 1043456   ;;  %vm187_vm1 = vcmask 195584  }
   0x7   :  { %142 = vmatpush.bf16.msra.mxu0 %v631_v0  ;;  %v161_v2 = vld [vmem:[%s802_s4 + $0x18] sm:$0xff]  ;;  %v162_v3 = vld [vmem:[%s802_s4 + $0x20] sm:$0xf]  ;;  %v629_v4 = vld [vmem:[%s801_s3 + $0x28] sm:$0xff]  ;;  %s439_s9 = sshll.u32 %s803_s5, 4  ;;  %s697_s10 = smov 384   ;;  %s440_s9 = int_to_ptr.hbm [resolvable:$true] %s439_s9 }
   0x8   :  { %v175_v5 = vunpack.c.l.b16 %v161_v2  ;;  %v176_v6 = vunpack.c.h.b16 %v161_v2  ;;  %v177_v7 = vunpack.c.l.b16 %v162_v3  ;;  %v490_v8 = vld [vmem:[%s802_s4] sm:$0xf]  ;;  %v633_v9 = vld [vmem:[%s802_s4 + $0x8] sm:$0xf0]  ;;  %v632_v10 = vld [vmem:[%s802_s4 + $0x4] sm:$0xf] }
   0x9   :  { %v492_v14 = vld [vmem:[%s802_s4 + $0xc] sm:$0xf0]  ;;  %v498_v15 = vld [vmem:[%s802_s4 + $0x8] sm:$0xf]  ;;  %v634_v16 = vld [vmem:[%s802_s4 + $0x10] sm:$0xf0]  ;;  %v491_v24 = vor.u32 %v633_v9, %v490_v8 }
   0xa   :  { %v181_v11 = vpack.c.b16 %v175_v5, %v175_v5  ;;  %v182_v12 = vpack.c.b16 %v176_v6, %v176_v6  ;;  %v183_v13 = vpack.c.b16 %v177_v7, %v177_v7  ;;  %v589_v17 = vld [vmem:[#allocation2 + $0xa8] sm:$0xf]  ;;  %v622_v18 = vld [vmem:[#allocation2 + $0xb0] sm:$0xf0]  ;;  %v621_v19 = vld [vmem:[#allocation2 + $0xac] sm:$0xf]  ;;  %v495_v25 = vor.u32 %v632_v10, %v492_v14 }
   0xb   :  { %143 = vmatpush.bf16.msra.mxu0 %v630_v1  ;;  %v591_v23 = vld [vmem:[#allocation2 + $0xb4] sm:$0xf0]  ;;  %v597_v26 = vld [vmem:[#allocation2 + $0xb0] sm:$0xf]  ;;  %v623_v27 = vld [vmem:[#allocation2 + $0xb8] sm:$0xf0]  ;;  %v499_v29 = vor.u32 %v634_v16, %v498_v15  ;;  %v590_v30 = vor.u32 %v622_v18, %v589_v17 }
   0xc   :  { %v193_v20 = vsel %vm191_vm0, %v181_v11, 0  ;;  %v196_v21 = vsel %vm191_vm0, %v182_v12, 0  ;;  %v199_v22 = vsel %vm191_vm0, %v183_v13, 0  ;;  %v628_v28 = vld [vmem:[%s801_s3 + $0x20] sm:$0xff]  ;;  %v594_v31 = vor.u32 %v621_v19, %v591_v23  ;;  %v627_v33 = vld [vmem:[%s801_s3 + $0x18] sm:$0xff]  ;;  %v626_v34 = vld [vmem:[%s801_s3 + $0x10] sm:$0xff] }
   0xd   :  { %207 = vmatpush.bf16.msra.mxu1 %v193_v20  ;;  %221 = vmatpush.bf16.msra.mxu2 %v196_v21  ;;  %v598_v32 = vor.u32 %v623_v27, %v597_v26  ;;  %v625_v35 = vld [vmem:[%s801_s3 + $0x8] sm:$0xff]  ;;  %v624_v36 = vld [vmem:[%s801_s3] sm:$0xff]  ;;  %v577_v38 = vld [vmem:[#allocation2 + $0x90] sm:$0xf]  ;;  %s698_s11 = smov 24  }
   0xe   :  { %235 = vmatpush.bf16.msra.mxu3 %v199_v22  ;;  %v786_v37 = vld [vmem:[%s798_s0] sm:$0xff]  ;;  %v619_v39 = vld [vmem:[#allocation2 + $0x98] sm:$0xf0]  ;;  %v618_v40 = vld [vmem:[#allocation2 + $0x94] sm:$0xf] }
   0xf   :  { %144 = vmatpush.bf16.msra.mxu0 %v629_v4  ;;  %v578_v41 = vor.u32 %v619_v39, %v577_v38  ;;  %v579_v42 = vld [vmem:[#allocation2 + $0x9c] sm:$0xf0]  ;;  %v585_v43 = vld [vmem:[#allocation2 + $0x98] sm:$0xf]  ;;  %v620_v44 = vld [vmem:[#allocation2 + $0xa0] sm:$0xf0] }
  0x10   :  { %v582_v45 = vor.u32 %v618_v40, %v579_v42  ;;  %v586_v46 = vor.u32 %v620_v44, %v585_v43  ;;  %v565_v47 = vld [vmem:[#allocation2 + $0x78] sm:$0xf]  ;;  %v616_v48 = vld [vmem:[#allocation2 + $0x80] sm:$0xf0]  ;;  %v615_v49 = vld [vmem:[#allocation2 + $0x7c] sm:$0xf] }
  0x11   :  { %208 = vmatpush.bf16.msra.mxu1 %v491_v24  ;;  %222 = vmatpush.bf16.msra.mxu2 %v495_v25  ;;  %v566_v50 = vor.u32 %v616_v48, %v565_v47  ;;  %v567_v51 = vld [vmem:[#allocation2 + $0x84] sm:$0xf0]  ;;  %v573_v52 = vld [vmem:[#allocation2 + $0x80] sm:$0xf]  ;;  %v617_v53 = vld [vmem:[#allocation2 + $0x88] sm:$0xf0] }
  0x12   :  { %236 = vmatpush.bf16.msra.mxu3 %v499_v29  ;;  %v570_v54 = vor.u32 %v615_v49, %v567_v51  ;;  %v574_v55 = vor.u32 %v617_v53, %v573_v52  ;;  %v553_v56 = vld [vmem:[#allocation2 + $0x60] sm:$0xf]  ;;  %v613_v57 = vld [vmem:[#allocation2 + $0x68] sm:$0xf0]  ;;  %v612_v58 = vld [vmem:[#allocation2 + $0x64] sm:$0xf] }
  0x13   :  { %145 = vmatpush.bf16.msra.mxu0 %v628_v28  ;;  %v554_v59 = vor.u32 %v613_v57, %v553_v56  ;;  %v555_v60 = vld [vmem:[#allocation2 + $0x6c] sm:$0xf0]  ;;  %v561_v61 = vld [vmem:[#allocation2 + $0x68] sm:$0xf]  ;;  %v614_v62 = vld [vmem:[#allocation2 + $0x70] sm:$0xf0] }
  0x14   :  { %v558_v63 = vor.u32 %v612_v58, %v555_v60  ;;  %v562_v0 = vor.u32 %v614_v62, %v561_v61  ;;  %v541_v1 = vld [vmem:[#allocation2 + $0x48] sm:$0xf]  ;;  %v610_v2 = vld [vmem:[#allocation2 + $0x50] sm:$0xf0]  ;;  %v609_v3 = vld [vmem:[#allocation2 + $0x4c] sm:$0xf] }
  0x15   :  { %371 = vmatpush.bf16.msrb.mxu1 %v590_v30  ;;  %385 = vmatpush.bf16.msrb.mxu2 %v594_v31  ;;  %v542_v4 = vor.u32 %v610_v2, %v541_v1  ;;  %v543_v5 = vld [vmem:[#allocation2 + $0x54] sm:$0xf0]  ;;  %v549_v6 = vld [vmem:[#allocation2 + $0x50] sm:$0xf]  ;;  %v611_v7 = vld [vmem:[#allocation2 + $0x58] sm:$0xf0] }
  0x16   :  { %399 = vmatpush.bf16.msrb.mxu3 %v598_v32  ;;  %v546_v8 = vor.u32 %v609_v3, %v543_v5  ;;  %v550_v9 = vor.u32 %v611_v7, %v549_v6  ;;  %v529_v10 = vld [vmem:[#allocation2 + $0x30] sm:$0xf]  ;;  %v607_v11 = vld [vmem:[#allocation2 + $0x38] sm:$0xf0]  ;;  %v606_v12 = vld [vmem:[#allocation2 + $0x34] sm:$0xf] }
  0x17   :  { %146 = vmatpush.bf16.msra.mxu0 %v627_v33  ;;  %v530_v13 = vor.u32 %v607_v11, %v529_v10  ;;  %v531_v14 = vld [vmem:[#allocation2 + $0x3c] sm:$0xf0]  ;;  %v537_v15 = vld [vmem:[#allocation2 + $0x38] sm:$0xf]  ;;  %v608_v16 = vld [vmem:[#allocation2 + $0x40] sm:$0xf0] }
  0x18   :  { %v534_v17 = vor.u32 %v606_v12, %v531_v14  ;;  %v538_v18 = vor.u32 %v608_v16, %v537_v15  ;;  %v517_v19 = vld [vmem:[#allocation2 + $0x18] sm:$0xf]  ;;  %v604_v20 = vld [vmem:[#allocation2 + $0x20] sm:$0xf0]  ;;  %v603_v21 = vld [vmem:[#allocation2 + $0x1c] sm:$0xf] }
  0x19   :  { %372 = vmatpush.bf16.msrb.mxu1 %v578_v41  ;;  %386 = vmatpush.bf16.msrb.mxu2 %v582_v45  ;;  %v519_v22 = vld [vmem:[#allocation2 + $0x24] sm:$0xf0]  ;;  %v525_v23 = vld [vmem:[#allocation2 + $0x20] sm:$0xf]  ;;  %v605_v24 = vld [vmem:[#allocation2 + $0x28] sm:$0xf0]  ;;  %v518_v25 = vor.u32 %v604_v20, %v517_v19 }
  0x1a   :  { %400 = vmatpush.bf16.msrb.mxu3 %v586_v46  ;;  %v522_v26 = vor.u32 %v603_v21, %v519_v22  ;;  %v526_v27 = vor.u32 %v605_v24, %v525_v23  ;;  %v505_v28 = vld [vmem:[#allocation2] sm:$0xf]  ;;  %v601_v29 = vld [vmem:[#allocation2 + $0x8] sm:$0xf0]  ;;  %v600_v30 = vld [vmem:[#allocation2 + $0x4] sm:$0xf] }
  0x1b   :  { %147 = vmatpush.bf16.msra.mxu0 %v626_v34  ;;  %v507_v31 = vld [vmem:[#allocation2 + $0xc] sm:$0xf0]  ;;  %v513_v32 = vld [vmem:[#allocation2 + $0x8] sm:$0xf]  ;;  %v602_v33 = vld [vmem:[#allocation2 + $0x10] sm:$0xf0]  ;;  %v506_v34 = vor.u32 %v601_v29, %v505_v28 }
  0x1c   :  { %v413_v45 = vld [vmem:[%s800_s2] sm:$0x7]  ;;  %s696_s2 = smov [#allocation5]  }
  0x1d   :  { %373 = vmatpush.bf16.msrb.mxu1 %v566_v50  ;;  %387 = vmatpush.bf16.msrb.mxu2 %v570_v54  ;;  %v415_v48 = vperm.slane %v413_v45, 0  ;;  %v416_v52 = vperm.slane %v413_v45, 1  ;;  %v417_v54 = vperm.slane %v413_v45, 2  ;;  %s437_s6 = sshll.u32 %s696_s2, 4  ;;  %s438_s6 = int_to_ptr.vmem [resolvable:$true] %s437_s6 }
  0x1e   :  { %401 = vmatpush.bf16.msrb.mxu3 %v574_v55 }
  0x1f   :  { %148 = vmatpush.bf16.msra.mxu0 %v625_v35  ;;  %v510_v35 = vor.u32 %v600_v30, %v507_v31 }
  0x21   :  { %374 = vmatpush.bf16.msrb.mxu1 %v554_v59  ;;  %388 = vmatpush.bf16.msrb.mxu2 %v558_v63 }
  0x22   :  { %402 = vmatpush.bf16.msrb.mxu3 %v562_v0 }
  0x23   :  { %149 = vmatpush.bf16.msra.mxu0 %v624_v36  ;;  %v514_v36 = vor.u32 %v602_v33, %v513_v32 }
  0x25   :  { %375 = vmatpush.bf16.msrb.mxu1 %v542_v4  ;;  %389 = vmatpush.bf16.msrb.mxu2 %v546_v8 }
  0x26   :  { %150 = vmatmul.bf16.vlgmr.msra.gmra.mxu0 %v786_v37  ;;  %403 = vmatpush.bf16.msrb.mxu3 %v550_v9 }
  0x29   :  { %376 = vmatpush.bf16.msrb.mxu1 %v530_v13  ;;  %390 = vmatpush.bf16.msrb.mxu2 %v534_v17 }
  0x2a   :  { %404 = vmatpush.bf16.msrb.mxu3 %v538_v18 }
  0x2d   :  { %377 = vmatpush.bf16.msrb.mxu1 %v518_v25  ;;  %391 = vmatpush.bf16.msrb.mxu2 %v522_v26 }
  0x2e   :  { %405 = vmatpush.bf16.msrb.mxu3 %v526_v27 }
  0x31   :  { %378 = vmatpush.bf16.msrb.mxu1 %v506_v34  ;;  %392 = vmatpush.bf16.msrb.mxu2 %v510_v35 }
  0x32   :  { %406 = vmatpush.bf16.msrb.mxu3 %v514_v36 }
  0xa3   :  { %v151_v38 = vpop.f32.mrf.mxu0 }
  0xab   :  { %v153_v39 = vpop.f32.mrf.mxu0 }
  0xac   :  { %v156_v40 = vpack.c.bf16 %v153_v39, %v151_v38 }
  0xae   :  { %500 = vmatmul.msk.bf16.vlgmr.msra.gmra.mxu1 %vm187_vm1, %v156_v40  ;;  %501 = vmatmul.msk.bf16.vlgmr.msra.gmra.mxu2 %vm187_vm1, %v156_v40 }
  0xaf   :  { %502 = vmatmul.msk.bf16.vlgmr.msra.gmra.mxu3 %vm187_vm1, %v156_v40 }
  0xbe   :  { %379 = vmatmul.bf16.vlgmr.msrb.gmra.mxu1 %v786_v37  ;;  %393 = vmatmul.bf16.vlgmr.msrb.gmra.mxu2 %v786_v37 }
  0xbf   :  { %407 = vmatmul.bf16.vlgmr.msrb.gmra.mxu3 %v786_v37 }
 0x12b   :  { %v210_v41 = vpop.f32.mrf.mxu1 }
 0x131   :  { %v224_v42 = vpop.f32.mrf.mxu2 }
 0x132   :  { %v238_v43 = vpop.f32.mrf.mxu3 }
 0x133   :  { %v212_v44 = vpop.f32.mrf.mxu1 }
 0x139   :  { %v226_v46 = vpop.f32.mrf.mxu2 }
 0x13a   :  { %v240_v47 = vpop.f32.mrf.mxu3 }
 0x13b   :  { %v380_v49 = vpop.f32.mrf.mxu1 }
 0x13c   :  { %v381_v50 = vadd.f32 %v380_v49, %v210_v41 }
 0x13e   :  { %v421_v51 = vadd.f32 %v415_v48, %v381_v50 }
 0x140   :  { %427 = vst [vmem:[#allocation5] sm:$0xff] %v421_v51 }
 0x141   :  { %v394_v53 = vpop.f32.mrf.mxu2 }
 0x142   :  { %v395_v55 = vadd.f32 %v394_v53, %v224_v42  ;;  %v408_v37 = vpop.f32.mrf.mxu3 }
 0x143   :  { %v409_v56 = vadd.f32 %v408_v37, %v238_v43  ;;  %v382_v57 = vpop.f32.mrf.mxu1 }
 0x144   :  { %v422_v58 = vadd.f32 %v416_v52, %v395_v55  ;;  %v383_v59 = vadd.f32 %v382_v57, %v212_v44 }
 0x145   :  { %v423_v60 = vadd.f32 %v417_v54, %v409_v56 }
 0x146   :  { %428 = vst [vmem:[#allocation5 + $0x8] sm:$0xff] %v422_v58  ;;  %v424_v61 = vadd.f32 %v415_v48, %v383_v59 }
 0x147   :  { %429 = vst [vmem:[#allocation5 + $0x10] sm:$0xff] %v423_v60 }
 0x148   :  { %430 = vst [vmem:[#allocation5 + $0x18] sm:$0xff] %v424_v61 }
 0x149   :  { %v396_v62 = vpop.f32.mrf.mxu2 }
 0x14a   :  { %v397_v63 = vadd.f32 %v396_v62, %v226_v46  ;;  %v410_v0 = vpop.f32.mrf.mxu3 }
 0x14b   :  { %v411_v1 = vadd.f32 %v410_v0, %v240_v47 }
 0x14c   :  { %v425_v2 = vadd.f32 %v416_v52, %v397_v63 }
 0x14d   :  { %v426_v3 = vadd.f32 %v417_v54, %v411_v1 }
 0x14e   :  { %431 = vst [vmem:[#allocation5 + $0x20] sm:$0xff] %v425_v2 }
 0x14f   :  { %432 = vst [vmem:[#allocation5 + $0x28] sm:$0xff] %v426_v3 }
 0x150   :  { %445 = dma.vmem_to_hbm [thread:$0]  %s438_s6, 768, %s440_s9, [#allocation4], %s697_s10, %s697_s10, %s698_s11  }
 0x151   :  { %691 = dma.done.wait [#allocation4], 768  }
 0x152   :  { %692 = vsyncadd [#allocation4], 4294966528 }
 0x153   :  { %450 = vsyncpa [#allocation3], 1 }
 0x154   :  { %451 = vsyncpa [#allocation4], 1 }

</bundles_post_ra>
